<compile_context>
chip_gen: v6e
topology: v6e:2x2x1
jax: 0.10.0
libtpu: 0.0.40
codegen_flags: <defaults>
</compile_context>

<pallas_src>
import functools

import numpy as np
import jax
import jax.numpy as jnp
from jax.experimental import pallas as pl
from jax.experimental.pallas import tpu as pltpu

GAMMA = 2.5   # pow specialised in-kernel as x*x*sqrt(x); valid for gamma == 2.5
ALPHA = 1.0

_VMEM_BUDGET_BYTES = 40 * 1024 * 1024   # live-VMEM target (safe under v7x's 64 MiB)
_VMEM_LIMIT_BYTES = 48 * 1024 * 1024    # scoped-VMEM request (< v7x physical)
_K_FULL_TEMPS = 4                       # f32 (TN, C) temps live at peak (cast, x-m, exp, select)
_COL_BYTES_PER_ROW = 6144               # lane-padded (TN,1) column temps + label buffers
_MAX_BLOCK_ROWS = 8192


def _focal_loss_kernel(logits_ref, labels_ref, out_ref, *, n_total):
    x = logits_ref[...].astype(jnp.float32)             # (TN, C), f32 math on-chip
    lbl = labels_ref[...]                                # (TN, 1), int32
    tn, c = x.shape

    # Row statistics of log_softmax WITHOUT materializing log_p:
    #   log_p[i, j]      = x[i, j] - m_i - lse_i
    #   sum_j log_p[i,:] = sum_x_i - C * (m_i + lse_i)
    #   log_p[i, lbl_i]  = x[i, lbl_i] - m_i - lse_i
    m = jnp.max(x, axis=-1, keepdims=True)               # (TN, 1)
    e_sum = jnp.sum(jnp.exp(x - m), axis=-1, keepdims=True)
    lse = jnp.log(e_sum)                                  # (TN, 1)
    sum_x = jnp.sum(x, axis=-1, keepdims=True)            # (TN, 1)

    # Label logit via one-hot masked lane reduce (== torch scatter_ one-hot).
    class_ids = jax.lax.broadcasted_iota(jnp.int32, (tn, c), 1)
    x_lbl = jnp.sum(jnp.where(class_ids == lbl, x, 0.0),
                    axis=-1, keepdims=True)               # (TN, 1)

    lp_lbl = x_lbl - m - lse                               # log_p at the label
    sum_lp = sum_x - jnp.float32(c) * (m + lse)            # sum_c log_p

    # fl = -alpha*(1-pt)^gamma*log_p with pt = onehot*log_p:
    #   off-label: pt = 0        -> fl = -alpha * log_p
    #   on-label : fl = -alpha * (1 - lp_lbl)^gamma * lp_lbl
    # Row sum = -alpha * [ (sum_lp - lp_lbl) + (1 - lp_lbl)^2.5 * lp_lbl ].
    sub = jnp.float32(1.0) - lp_lbl                        # >= 1 everywhere
    pow_g = sub * sub * jnp.sqrt(sub)                      # sub ** 2.5, single EUP sqrt
    row_fl = jnp.float32(-ALPHA) * (sum_lp - lp_lbl + pow_g * lp_lbl)   # (TN, 1)

    # Explicitly mask padded rows of the final partial tile (they hold garbage)
    # before reducing to the per-block partial sum.
    row_ids = pl.program_id(0) * tn + jax.lax.broadcasted_iota(jnp.int32, (tn, 1), 0)
    row_fl = jnp.where(row_ids < n_total, row_fl, 0.0)

    block_sum = jnp.sum(row_fl)                            # scalar partial sum
    # Lane-dense, full-vreg store: one (8, 128) tile holding the block sum.
    out_ref[...] = jnp.broadcast_to(block_sum, (1, 8, 128)).astype(jnp.float32)


def focal_loss(logits, labels, *, block_rows=None):
    """logits: (N, C) float (f32/bf16), labels: (N,) int — returns scalar loss."""
    n, c = logits.shape
    itemsize = jnp.dtype(logits.dtype).itemsize
    row_align = max(8, 32 // itemsize)                     # 8 (f32) / 16 (bf16) / 32 (i8)

    # Live-VMEM-aware tile sizing: double-buffered native-dtype input tile,
    # ~_K_FULL_TEMPS f32 full-tile temporaries, plus lane-padded column temps.
    per_row_bytes = c * (2 * itemsize + 4 * _K_FULL_TEMPS) + _COL_BYTES_PER_ROW

    if block_rows is None:
        max_rows = _VMEM_BUDGET_BYTES // per_row_bytes
        max_rows = (max_rows // row_align) * row_align
        max_rows = min(max_rows, _MAX_BLOCK_ROWS)
        if max_rows < row_align:
            # TODO(synk): add a flash-style C-tiled path (running max / running
            # exp-sum across class tiles) for very large class counts that do
            # not fit a (row_align, C) block in VMEM (bites first on v7x).
            raise ValueError(
                f"C={c} too large for a single row-block kernel "
                f"(needs ~{per_row_bytes * row_align} B of live VMEM)")
        block_rows = n if n <= max_rows else max_rows
    tn = int(block_rows)
    if tn != n and tn % row_align != 0:
        raise ValueError(f"block_rows={tn} must be a multiple of {row_align} "
                         f"(or equal to N={n})")
    num_blocks = pl.cdiv(n, tn)

    labels2d = labels.reshape(n, 1).astype(jnp.int32)

    cost = pl.CostEstimate(
        flops=6 * n * c + 16 * n,                  # softmax stats + masked reduces
        transcendentals=n * c + 2 * n,             # exp over N*C, log + sqrt per row
        bytes_accessed=n * c * itemsize + n * 4 + num_blocks * 8 * 128 * 4,
    )

    block_sums = pl.pallas_call(
        functools.partial(_focal_loss_kernel, n_total=n),
        out_shape=jax.ShapeDtypeStruct((num_blocks, 8, 128), jnp.float32),
        grid=(num_blocks,),
        in_specs=[
            pl.BlockSpec((tn, c), lambda i: (i, 0)),       # logits tile, full C on lanes
            pl.BlockSpec((tn, 1), lambda i: (i, 0)),       # labels column
        ],
        out_specs=pl.BlockSpec((1, 8, 128), lambda i: (i, 0, 0)),
        compiler_params=pltpu.CompilerParams(
            # "parallel": no cross-step accumulator; each block owns its output
            # tile, so megacore can shard the row grid.  (CORE_PARALLEL is a
            # v7x-only knob to try; kept portable here.)
            dimension_semantics=("parallel",),
            vmem_limit_bytes=_VMEM_LIMIT_BYTES,
        ),
        cost_estimate=cost,
    )(logits, labels2d)

    # Every lane of a block's (8, 128) tile holds the same partial sum — read
    # one element per block; tiny final reduce + divide-by-(N*C) runs in XLA.
    total = jnp.sum(block_sums[:, 0, 0])
    return total / jnp.float32(n * c)


def _focal_loss_ref(logits, labels):
    """Pure-JAX reference mirroring the PyTorch forward."""
    _, c = logits.shape
    log_p = jax.nn.log_softmax(logits.astype(jnp.float32), axis=-1)
    onehot = jax.nn.one_hot(labels, c, dtype=jnp.float32)
    pt = onehot * log_p
    fl = -ALPHA * (1.0 - pt) ** GAMMA * log_p
    return jnp.mean(fl)


if __name__ == "__main__":
    key = jax.random.PRNGKey(0)
    k1, k2, k3, k4, k5, k6 = jax.random.split(key, 6)

    # Case 1: small (seq_length=8, labels_length=32), f32, single full block.
    logits = jax.random.normal(k1, (8, 32), dtype=jnp.float32)
    labels = jax.random.randint(k2, (8,), 0, 32, dtype=jnp.int32)
    loss = focal_loss(logits, labels)
    jax.block_until_ready(loss)
    ref = _focal_loss_ref(logits, labels)
    assert np.allclose(np.asarray(loss), np.asarray(ref), rtol=1e-5, atol=1e-5), (
        f"mismatch (f32): kernel={float(loss)} ref={float(ref)}")

    # Case 2: bf16 input, multi-block grid with a remainder (partial) tile.
    logits2 = jax.random.normal(k3, (40, 128), dtype=jnp.bfloat16)
    labels2 = jax.random.randint(k4, (40,), 0, 128, dtype=jnp.int32)
    loss2 = focal_loss(logits2, labels2, block_rows=16)
    jax.block_until_ready(loss2)
    ref2 = _focal_loss_ref(logits2, labels2)
    assert np.allclose(np.asarray(loss2), np.asarray(ref2), rtol=1e-4, atol=1e-4), (
        f"mismatch (bf16 grid): kernel={float(loss2)} ref={float(ref2)}")

    # Case 3: f32 multi-block with a remainder tile (exercises the row masking
    # that feeds the per-block partial sums).
    logits3 = jax.random.normal(k5, (20, 64), dtype=jnp.float32)
    labels3 = jax.random.randint(k6, (20,), 0, 64, dtype=jnp.int32)
    loss3 = focal_loss(logits3, labels3, block_rows=8)
    jax.block_until_ready(loss3)
    ref3 = _focal_loss_ref(logits3, labels3)
    assert np.allclose(np.asarray(loss3), np.asarray(ref3), rtol=1e-5, atol=1e-5), (
        f"mismatch (f32 remainder): kernel={float(loss3)} ref={float(ref3)}")

    print("KERNEL_OK")
</pallas_src>

<mosaic_0001>
module attributes {stable_mosaic.version = 11 : i64} {
  func.func @_focal_loss_kernel(%arg0: i32, %arg1: memref<8x32xf32, #tpu.memory_space<vmem>>, %arg2: memref<8x1xi32, #tpu.memory_space<vmem>>, %arg3: memref<1x8x128xf32, #tpu.memory_space<vmem>>) attributes {dimension_semantics = [#tpu.dimension_semantics<parallel>], iteration_bounds = array<i64: 1>, scalar_prefetch = 0 : i64, scratch_operands = 0 : i64, tpu.core_type = #tpu.core_type<tc>, window_params = [{transform_indices = @transform_0, window_bounds = array<i64: 8, 32>}, {transform_indices = @transform_1, window_bounds = array<i64: 8, 1>}, {transform_indices = @transform_2, window_bounds = array<i64: 1, 8, 128>}]} {
    %c0 = arith.constant 0 : index
    %c0_0 = arith.constant 0 : index
    %0 = vector.load %arg1[%c0, %c0_0] : memref<8x32xf32, #tpu.memory_space<vmem>>, vector<8x32xf32>
    %c0_1 = arith.constant 0 : index
    %c0_2 = arith.constant 0 : index
    %1 = vector.load %arg2[%c0_1, %c0_2] : memref<8x1xi32, #tpu.memory_space<vmem>>, vector<8x1xi32>
    %cst = arith.constant dense<0xFF800000> : vector<8xf32>
    %2 = vector.multi_reduction <maximumf>, %0, %cst [1] : vector<8x32xf32> to vector<8xf32>
    %3 = vector.shape_cast %2 : vector<8xf32> to vector<8x1xf32>
    %4 = vector.broadcast %3 : vector<8x1xf32> to vector<8x32xf32>
    %5 = arith.subf %0, %4 : vector<8x32xf32>
    %6 = math.exp %5 : vector<8x32xf32>
    %cst_3 = arith.constant dense<0.000000e+00> : vector<8xf32>
    %7 = vector.multi_reduction <add>, %6, %cst_3 [1] : vector<8x32xf32> to vector<8xf32>
    %8 = vector.shape_cast %7 : vector<8xf32> to vector<8x1xf32>
    %9 = math.log %8 : vector<8x1xf32>
    %cst_4 = arith.constant dense<0.000000e+00> : vector<8xf32>
    %10 = vector.multi_reduction <add>, %0, %cst_4 [1] : vector<8x32xf32> to vector<8xf32>
    %11 = vector.shape_cast %10 : vector<8xf32> to vector<8x1xf32>
    %12 = tpu.iota {dimensions = array<i32: 1>} : vector<8x32xi32>
    %13 = vector.broadcast %1 : vector<8x1xi32> to vector<8x32xi32>
    %14 = arith.cmpi eq, %12, %13 : vector<8x32xi32>
    %cst_5 = arith.constant 0.000000e+00 : f32
    %15 = vector.broadcast %cst_5 : f32 to vector<8x32xf32>
    %16 = arith.select %14, %0, %15 : vector<8x32xi1>, vector<8x32xf32>
    %cst_6 = arith.constant dense<0.000000e+00> : vector<8xf32>
    %17 = vector.multi_reduction <add>, %16, %cst_6 [1] : vector<8x32xf32> to vector<8xf32>
    %18 = vector.shape_cast %17 : vector<8xf32> to vector<8x1xf32>
    %19 = arith.subf %18, %3 : vector<8x1xf32>
    %20 = arith.subf %19, %9 : vector<8x1xf32>
    %21 = arith.addf %3, %9 : vector<8x1xf32>
    %cst_7 = arith.constant 3.200000e+01 : f32
    %22 = vector.broadcast %cst_7 : f32 to vector<8x1xf32>
    %23 = arith.mulf %22, %21 : vector<8x1xf32>
    %24 = arith.subf %11, %23 : vector<8x1xf32>
    %cst_8 = arith.constant 1.000000e+00 : f32
    %25 = vector.broadcast %cst_8 : f32 to vector<8x1xf32>
    %26 = arith.subf %25, %20 : vector<8x1xf32>
    %27 = arith.mulf %26, %26 : vector<8x1xf32>
    %28 = math.sqrt %26 : vector<8x1xf32>
    %29 = arith.mulf %27, %28 : vector<8x1xf32>
    %30 = arith.subf %24, %20 : vector<8x1xf32>
    %31 = arith.mulf %29, %20 : vector<8x1xf32>
    %32 = arith.addf %30, %31 : vector<8x1xf32>
    %cst_9 = arith.constant -1.000000e+00 : f32
    %33 = vector.broadcast %cst_9 : f32 to vector<8x1xf32>
    %34 = arith.mulf %33, %32 : vector<8x1xf32>
    %c8_i32 = arith.constant 8 : i32
    %35 = arith.muli %arg0, %c8_i32 : i32
    %36 = tpu.iota {dimensions = array<i32: 0>} : vector<8x1xi32>
    %37 = vector.broadcast %35 : i32 to vector<8x1xi32>
    %38 = arith.addi %37, %36 : vector<8x1xi32>
    %c8_i32_10 = arith.constant 8 : i32
    %39 = vector.broadcast %c8_i32_10 : i32 to vector<8x1xi32>
    %40 = arith.cmpi slt, %38, %39 : vector<8x1xi32>
    %cst_11 = arith.constant 0.000000e+00 : f32
    %41 = vector.broadcast %cst_11 : f32 to vector<8x1xf32>
    %42 = arith.select %40, %34, %41 : vector<8x1xi1>, vector<8x1xf32>
    %43 = vector.shape_cast %42 : vector<8x1xf32> to vector<1x8x1xf32>
    %cst_12 = arith.constant dense<0.000000e+00> : vector<1xf32>
    %44 = vector.multi_reduction <add>, %43, %cst_12 [1, 2] : vector<1x8x1xf32> to vector<1xf32>
    %45 = vector.shape_cast %44 : vector<1xf32> to vector<1x1x1xf32>
    %46 = vector.extract %45[0, 0, 0] : f32 from vector<1x1x1xf32>
    %47 = vector.broadcast %46 : f32 to vector<1x8x128xf32>
    %c0_13 = arith.constant 0 : index
    %c0_14 = arith.constant 0 : index
    %c0_15 = arith.constant 0 : index
    %48 = vector.load %arg3[%c0_13, %c0_14, %c0_15] : memref<1x8x128xf32, #tpu.memory_space<vmem>>, vector<1x8x128xf32>
    tpu.vector_store %arg3[%c0_13, %c0_14, %c0_15], %47 {strides = array<i32>} : memref<1x8x128xf32, #tpu.memory_space<vmem>>, vector<1x8x128xf32>,
    return
  }
  func.func @transform_0(%arg0: i32) -> (i32, i32) {
    %c0_i32 = arith.constant 0 : i32
    %c0_i32_0 = arith.constant 0 : i32
    return %arg0, %c0_i32 : i32, i32
  }
  func.func @transform_1(%arg0: i32) -> (i32, i32) {
    %c0_i32 = arith.constant 0 : i32
    %c0_i32_0 = arith.constant 0 : i32
    return %arg0, %c0_i32 : i32, i32
  }
  func.func @transform_2(%arg0: i32) -> (i32, i32, i32) {
    %c0_i32 = arith.constant 0 : i32
    %c0_i32_0 = arith.constant 0 : i32
    %c0_i32_1 = arith.constant 0 : i32
    return %arg0, %c0_i32, %c0_i32_0 : i32, i32, i32
  }
}

</mosaic_0001>

<bundles_post_ra>
// kernel: tpu_custom_call.1
= control target key start
LH: loop header
LB: loop body
LE: loop exit
PB: predicated region body
PF: predicated region fallthrough
CT: control target
= control target key end

     0   :  { %vm14_vm0 = vcmask 261120   ;;  %s155_s0 = inlined_call_operand.vmem [shape: f32[8,32], index: 0, kind: input, shape index: {}]   ;;  %s156_s1 = inlined_call_operand.vmem [shape: s32[8,1], index: 1, kind: input, shape index: {}]   ;;  %s157_s2 = inlined_call_operand.hbm [shape: f32[1,8,128], index: 2, kind: output, shape index: {}]  }
   0x1   :  { %v12_v0 = vld [vmem:[%s155_s0] sm:$0xff] }
   0x2   :  { %7 = vsyncpa [#allocation3], 0  ;;  %v15_v1 = vsel %vm14_vm0, %v12_v0, -inf  ;;  %v125_v2 = vmov 0   ;;  %v13_v3 = vld [vmem:[%s156_s1] sm:$0xff]  ;;  %v29_v7 = vlaneseq  ;;  %v26_v14 = vsel %vm14_vm0, %v12_v0, 0.0 }
   0x3   :  { %96 = vset.pattern.permute.xlu0 %v125_v2  ;;  %vm65_vm4 = vcmask 7168   ;;  %s126_s0 = smov [#allocation2]  }
   0x4   :  { %16 = vmax.xlane.f32.xlu0 %v15_v1  ;;  %v30_v8 = vand.u32 127, %v29_v7  ;;  %s84_s1 = sshll.u32 %s126_s0, 4  ;;  %s85_s1 = int_to_ptr.vmem [resolvable:$true] %s84_s1 }
   0x5   :  { %s103_s14 = scalar_lea.vmem %s85_s1, 128  ;;  %p108_p1 = scmp.lt.s32.totalorder %s85_s1, %s85_s1 }
   0x6   :  { %p104_p0 = scmp.ne.s32.totalorder %s85_s1, %s103_s14  ;;  %p109_p2 = scmp.lt.s32.totalorder %s103_s14, %s103_s14 }
   0x8   :  { %p110_p3 = por %p109_p2, %p108_p1 }
   0xa   :  { %p111_p4 = pnand %p110_p3, %p104_p0 }
  0x1a   :  { %32 = vperm.xlu0 %96, %v13_v3  }
  0x8d   :  { %v17_v4 = vpop.xlane.xlu0 %16 }
  0x8e   :  { %v18_v5 = vsub.f32 %v12_v0, %v17_v4 }
  0x90   :  { %v19_v6 = vmul.f32 1.442695, %v18_v5 }
  0x92   :  { %97 = vpow2.f32 %v19_v6 }
  0x95   :  { %v33_v9 = vpop.permute.xlu0 %32 }
  0x96   :  { %vm34_vm1 = vcmp.eq.s32.totalorder %v30_v8, %v33_v9 }
  0x97   :  { %v35_v11 = vsel %vm34_vm1, %v12_v0, 0.0 }
  0x98   :  { %v36_v13 = vsel %vm14_vm0, %v35_v11, 0.0 }
  0x9f   :  { %v98_v10 = vpop.eup %97 }
  0xa0   :  { %v21_v12 = vsel %vm14_vm0, %v98_v10, 0.0 }
  0xa1   :  { %22 = vadd.xlane.f32.xlu1 %v21_v12 }
  0xa5   :  { %37 = vadd.xlane.f32.xlu1 %v36_v13 }
  0xa9   :  { %27 = vadd.xlane.f32.xlu1 %v26_v14 }
 0x12a   :  { %v23_v15 = vpop.xlane.xlu1 %22 }
 0x12b   :  { %99 = vlog2.f32 %v23_v15 }
 0x12e   :  { %v38_v16 = vpop.xlane.xlu1 %37 }
 0x12f   :  { %v39_v19 = vsub.f32 %v38_v16, %v17_v4 }
 0x132   :  { %v28_v25 = vpop.xlane.xlu1 %27 }
 0x138   :  { %v100_v17 = vpop.eup %99 }
 0x139   :  { %v25_v18 = vmul.f32 0.6931472, %v100_v17 }
 0x13b   :  { %v40_v20 = vsub.f32 %v39_v19, %v25_v18  ;;  %v41_v22 = vadd.f32 %v25_v18, %v17_v4 }
 0x13d   :  { %v44_v21 = vsub.f32 1.0, %v40_v20  ;;  %v42_v23 = vmul.f32 32.0, %v41_v22 }
 0x13f   :  { %101 = vrsqrt.f32 %v44_v21  ;;  %vm48_vm2 = vcmp.eq.f32.partialorder %v44_v21, inf  ;;  %v51_v27 = vand.u32 2147483648, %v44_v21  ;;  %v43_v28 = vsub.f32 %v28_v25, %v42_v23 }
 0x140   :  { %v45_v29 = vmul.f32 %v44_v21, %v44_v21  ;;  %vm50_vm3 = vcmp.eq.f32.partialorder %v44_v21, 0.0 }
 0x141   :  { %v54_v33 = vsub.f32 %v43_v28, %v40_v20 }
 0x14c   :  { %v102_v24 = vpop.eup %101 }
 0x14d   :  { %v47_v26 = vmul.f32 %v102_v24, %v44_v21 }
 0x14f   :  { %v49_v30 = vsel %vm48_vm2, %v44_v21, %v47_v26 }
 0x150   :  { %v52_v31 = vsel %vm50_vm3, %v51_v27, %v49_v30 }
 0x151   :  { %v53_v32 = vmul.f32 %v52_v31, %v45_v29 }
 0x153   :  { %v55_v34 = vmul.f32 %v53_v32, %v40_v20 }
 0x155   :  { %v56_v35 = vadd.f32 %v55_v34, %v54_v33 }
 0x157   :  { %v57_v36 = vmul.f32 -1.0, %v56_v35 }
 0x159   :  { %v66_v37 = vsel %vm65_vm4, %v57_v36, 0.0 }
 0x15a   :  { %67 = vadd.xlane.f32.xlu1 %v66_v37 }
 0x1e3   :  { %v68_v38 = vpop.xlane.xlu1 %67 }
 0x1e4   :  { %v69_v39 = vrot.slane %v68_v38, 4 }
 0x1e6   :  { %v70_v40 = vadd.f32 %v69_v39, %v68_v38 }
 0x1e8   :  { %v71_v41 = vrot.slane %v70_v40, 2 }
 0x1ea   :  { %v72_v42 = vadd.f32 %v71_v41, %v70_v40 }
 0x1ec   :  { %v73_v43 = vrot.slane %v72_v42, 1 }
 0x1ee   :  { %v74_v44 = vadd.f32 %v73_v43, %v72_v42 }
 0x1f0   :  { %92 = vpush %v74_v44 }
 0x221   :  { %s93_s13 = spop %92 }
 0x222   :  { %v76_v45 = vstv %s93_s13 }
 0x223   :  { %77 = vst [vmem:[#allocation2] sm:$0xff] %v76_v45 }
 0x224   :  { %114 = shalt.err (!%p111_p4)
}
 0x225   :  { %87 = dma.vmem_to_hbm [thread:$0]  %s85_s1, 128, %s157_s2, [#allocation3]  }
 0x226   :  { %123 = dma.done.wait [#allocation3], 128  }
 0x227   :  { %124 = vsyncadd [#allocation3], 4294967168 }
 0x228   :  { %91 = vsyncpa [#allocation3], 1 }

</bundles_post_ra>
